<compile_context>
chip_gen: v7x
topology: tpu7x:2x2x1
jax: 0.10.0
libtpu: 0.0.40
codegen_flags: <defaults>
</compile_context>

<pallas_src>
import math

import jax
import jax.numpy as jnp
from jax.experimental import pallas as pl
from jax.experimental.pallas import tpu as pltpu


def _round_up(x: int, mult: int) -> int:
    return ((x + mult - 1) // mult) * mult


def _vmem_info():
    """Returns (physical VMEM bytes, default scoped-VMEM limit bytes).

    Conservative fallbacks if the query is unavailable: assume the smallest
    physical VMEM (v7x, 64 MiB) and the smallest default scoped limit
    (v5e, 16 MiB).
    """
    cap = 64 * 1024 * 1024
    default_limit = 16 * 1024 * 1024
    try:
        info = pltpu.get_tpu_info()
        cap = int(getattr(info, "vmem_capacity_bytes", cap))
        if cap <= 64 * 1024 * 1024:
            default_limit = 32 * 1024 * 1024      # v7x default scoped limit
        else:
            default_limit = 16 * 1024 * 1024      # v5e worst case (v6e is 32)
    except Exception:
        pass
    return cap, default_limit


def _choose_tm(m: int, small_vmem: bool) -> int:
    """Row-tile size: >= 2 (ideally 4) grid steps, lane/sublane friendly."""
    cap = 512 if small_vmem else 1024     # v7x (64 MiB VMEM) vs v5e/v6e
    if m <= 16:
        return _round_up(max(m, 1), 8)
    steps = 4 if m >= 4 * cap else 2      # keep both v7x cores + pipeline busy
    tm = _round_up(pl.cdiv(m, steps), 8)
    if tm > 128:
        tm = _round_up(tm, 128)
    return min(cap, tm)


def _choose_tn(out_p: int, in_p: int, w_item: int, budget: int) -> int:
    """Largest multiple of 128 dividing out_p whose double-buffered weight
    tile fits within `budget` bytes."""
    n_blocks = out_p // 128
    bpt = n_blocks
    while bpt > 1 and 2 * in_p * (bpt * 128) * w_item > budget:
        bpt -= 1
    while n_blocks % bpt != 0:
        bpt -= 1
    return bpt * 128


def mlp_fused_kernel(x_ref, w_ref, b_ref, o_ref):
    # x_ref: (TM, in_p)   w_ref: (in_p, TN)   b_ref: (1, TN) f32   o_ref: (TM, TN)
    y = jnp.dot(x_ref[...], w_ref[...], preferred_element_type=jnp.float32)
    o_ref[...] = (y + b_ref[...]).astype(o_ref.dtype)


def prepare_params(w1, b1, w2, b2, compute_dtype=jnp.bfloat16):
    """One-time parameter prep (hoisted out of the per-call path).

    PyTorch layout in: w1 (hidden, in), b1 (hidden,), w2 (out, hidden), b2 (out,).
    Since there is no activation between the two linears, the MLP collapses to
        y = x @ W_f + b_f,  W_f = W1^T @ W2^T  (in, out),  b_f = b1 @ W2^T + b2.
    The fusion is done in f32, then the weight is cast to `compute_dtype`
    (bf16 by default: MXU-native; pass jnp.float32 for bit-tight accuracy).
    Feature dims are zero-padded to multiples of 128 so the matmul and the
    output store are lane-dense.
    """
    hidden, in_dims = w1.shape
    out_dims = w2.shape[0]

    w_f = jnp.dot(w1.T.astype(jnp.float32), w2.T.astype(jnp.float32))   # (in, out)
    b_f = jnp.dot(b1.astype(jnp.float32), w2.T.astype(jnp.float32)) \
        + b2.astype(jnp.float32)                                        # (out,)

    in_p = _round_up(in_dims, 128)
    out_p = _round_up(out_dims, 128)
    w_fp = jnp.pad(w_f, ((0, in_p - in_dims), (0, out_p - out_dims)))
    w_fp = w_fp.astype(compute_dtype)
    b_fp = jnp.pad(b_f, (0, out_p - out_dims)).reshape(1, out_p)        # keep f32

    dims = dict(in_dims=in_dims, out_dims=out_dims, hidden=hidden,
                in_p=in_p, out_p=out_p)
    return (w_fp, b_fp), dims


def mlp_forward(x, params, dims, tm=None, out_dtype=None):
    """x: [..., in_dims]; params from prepare_params()."""
    w_f, b_f = params
    in_dims, out_dims = dims["in_dims"], dims["out_dims"]
    in_p, out_p = dims["in_p"], dims["out_p"]
    cdt = w_f.dtype
    out_dtype = out_dtype or x.dtype

    lead_shape = x.shape[:-1]
    m = math.prod(lead_shape) if lead_shape else 1

    cap, default_limit = _vmem_info()
    small_vmem = cap <= 64 * 1024 * 1024

    if tm is None:
        tm = _choose_tm(m, small_vmem)
    m_p = _round_up(m, tm)
    grid_m = m_p // tm

    w_item = jnp.dtype(cdt).itemsize
    o_item = jnp.dtype(out_dtype).itemsize
    tn = _choose_tn(out_p, in_p, w_item, cap // 4)
    grid_n = out_p // tn
    # TODO(synk): if a single (in_p, 128) weight column still exceeds the VMEM
    # budget, add a K-tiling grid axis over in_p with an f32 accumulator
    # (pl.when init/finalize) instead of whole-K residency.

    # Activations: cast to compute dtype; pad only if actually needed
    # (jnp.pad fuses; avoids the zeros().set() extra HBM pass).
    x2d = x.reshape(m, in_dims).astype(cdt)
    if m_p != m or in_p != in_dims:
        x2d = jnp.pad(x2d, ((0, m_p - m), (0, in_p - in_dims)))

    # Advisory cost estimate for XLA scheduling around the custom call.
    cost = pl.CostEstimate(
        flops=2 * m_p * in_p * out_p,
        transcendentals=0,
        bytes_accessed=(m_p * in_p * w_item + in_p * out_p * w_item
                        + out_p * 4 + m_p * out_p * o_item),
    )

    # VMEM budget: every input/output is double-buffered by the pipeline
    # (including the "resident" weight/bias — Pallas still allocates 2 bufs).
    vmem_bytes = (2 * tm * in_p * w_item       # x tile
                  + 2 * in_p * tn * w_item     # fused weight tile
                  + 2 * 8 * tn * 4             # bias (padded to 8 sublanes)
                  + 2 * tm * tn * o_item)      # output tile
    compiler_kwargs = dict(dimension_semantics=("parallel", "parallel"))
    if vmem_bytes > default_limit:
        max_limit = min(cap - 8 * 1024 * 1024, 100 * 1024 * 1024)
        compiler_kwargs["vmem_limit_bytes"] = int(
            min(max(vmem_bytes * 1.25, default_limit), max_limit))

    out_pad = pl.pallas_call(
        mlp_fused_kernel,
        out_shape=jax.ShapeDtypeStruct((m_p, out_p), out_dtype),
        grid_spec=pltpu.PrefetchScalarGridSpec(
            num_scalar_prefetch=0,
            grid=(grid_m, grid_n),
            in_specs=[
                pl.BlockSpec((tm, in_p), lambda i, j: (i, 0)),   # x tile
                pl.BlockSpec((in_p, tn), lambda i, j: (0, j)),   # fused weight
                pl.BlockSpec((1, tn), lambda i, j: (0, j)),      # fused bias
            ],
            out_specs=pl.BlockSpec((tm, tn), lambda i, j: (i, j)),
        ),
        compiler_params=pltpu.CompilerParams(**compiler_kwargs),
        cost_estimate=cost,
    )(x2d, w_f, b_f)

    # Slice off padding only when padding was actually added.
    if m_p == m and out_p == out_dims:
        out2d = out_pad
    else:
        out2d = out_pad[:m, :out_dims]
    return out2d.reshape(*lead_shape, out_dims)


if __name__ == "__main__":
    # x is [N, C, H, W]; the Linear layers act on the last dim (W = in_dims).
    N, C, H, in_dims = 2, 4, 16, 16
    out_dims = 8
    hidden = 2 * in_dims

    key = jax.random.PRNGKey(0)
    kx, kw1, kb1, kw2, kb2 = jax.random.split(key, 5)

    x = jax.random.normal(kx, (N, C, H, in_dims), dtype=jnp.float32)

    # Deterministic parameter init (PyTorch nn.Linear layout: weight (out, in)).
    bound1 = 1.0 / (in_dims ** 0.5)
    w1 = jax.random.uniform(kw1, (hidden, in_dims), jnp.float32, -bound1, bound1)
    b1 = jax.random.uniform(kb1, (hidden,), jnp.float32, -bound1, bound1)
    bound2 = 1.0 / (hidden ** 0.5)
    w2 = jax.random.uniform(kw2, (out_dims, hidden), jnp.float32, -bound2, bound2)
    b2 = jax.random.uniform(kb2, (out_dims,), jnp.float32, -bound2, bound2)

    # Plain-JAX reference of the PyTorch forward (two unfused linears, f32).
    ref = (x @ w1.T + b1) @ w2.T + b2

    # f32 compute path: bit-tight check against the reference.
    params_f32, dims = prepare_params(w1, b1, w2, b2, compute_dtype=jnp.float32)
    out_f32 = mlp_forward(x, params_f32, dims)
    jax.block_until_ready(out_f32)
    assert out_f32.shape == (N, C, H, out_dims)
    assert jnp.allclose(out_f32, ref, atol=1e-4, rtol=1e-4)

    # Default bf16 compute path (MXU-native weights/activations, f32 accum).
    params_bf16, dims_bf = prepare_params(w1, b1, w2, b2)
    out_bf16 = mlp_forward(x, params_bf16, dims_bf)
    jax.block_until_ready(out_bf16)
    assert out_bf16.shape == (N, C, H, out_dims)
    assert jnp.allclose(out_bf16, ref, atol=5e-2, rtol=5e-2)

    print("KERNEL_OK")
</pallas_src>

<mosaic_0001>
module attributes {stable_mosaic.version = 11 : i64} {
  func.func @mlp_fused_kernel(%arg0: i32, %arg1: i32, %arg2: memref<64x128xf32, #tpu.memory_space<vmem>>, %arg3: memref<128x128xf32, #tpu.memory_space<vmem>>, %arg4: memref<1x128xf32, #tpu.memory_space<vmem>>, %arg5: memref<64x128xf32, #tpu.memory_space<vmem>>) attributes {dimension_semantics = [#tpu.dimension_semantics<parallel>, #tpu.dimension_semantics<parallel>], iteration_bounds = array<i64: 2, 1>, scalar_prefetch = 0 : i64, scratch_operands = 0 : i64, tpu.core_type = #tpu.core_type<tc>, window_params = [{transform_indices = @transform_0, window_bounds = array<i64: 64, 128>}, {transform_indices = @transform_1, window_bounds = array<i64: 128, 128>}, {transform_indices = @transform_2, window_bounds = array<i64: 1, 128>}, {transform_indices = @transform_3, window_bounds = array<i64: 64, 128>}]} {
    %c0 = arith.constant 0 : index
    %c0_0 = arith.constant 0 : index
    %0 = vector.load %arg2[%c0, %c0_0] : memref<64x128xf32, #tpu.memory_space<vmem>>, vector<64x128xf32>
    %c0_1 = arith.constant 0 : index
    %c0_2 = arith.constant 0 : index
    %1 = vector.load %arg3[%c0_1, %c0_2] : memref<128x128xf32, #tpu.memory_space<vmem>>, vector<128x128xf32>
    %cst = arith.constant dense<0.000000e+00> : vector<64x128xf32>
    %2 = tpu.matmul %0, %1, %cst {dimension_numbers = #tpu.dot_dimension_numbers<[1], [0], [0], [1], [0, 0, 1, 1], [], []>} : vector<64x128xf32>, vector<128x128xf32>, vector<64x128xf32> -> vector<64x128xf32>
    %c0_3 = arith.constant 0 : index
    %c0_4 = arith.constant 0 : index
    %3 = vector.load %arg4[%c0_3, %c0_4] : memref<1x128xf32, #tpu.memory_space<vmem>>, vector<1x128xf32>
    %4 = vector.broadcast %3 : vector<1x128xf32> to vector<64x128xf32>
    %5 = arith.addf %2, %4 : vector<64x128xf32>
    %c0_5 = arith.constant 0 : index
    %c0_6 = arith.constant 0 : index
    %6 = vector.load %arg5[%c0_5, %c0_6] : memref<64x128xf32, #tpu.memory_space<vmem>>, vector<64x128xf32>
    tpu.vector_store %arg5[%c0_5, %c0_6], %5 {strides = array<i32>} : memref<64x128xf32, #tpu.memory_space<vmem>>, vector<64x128xf32>,
    return
  }
  func.func @transform_0(%arg0: i32, %arg1: i32) -> (i32, i32) {
    %c0_i32 = arith.constant 0 : i32
    %c0_i32_0 = arith.constant 0 : i32
    return %arg0, %c0_i32 : i32, i32
  }
  func.func @transform_1(%arg0: i32, %arg1: i32) -> (i32, i32) {
    %c0_i32 = arith.constant 0 : i32
    %c0_i32_0 = arith.constant 0 : i32
    return %c0_i32, %arg1 : i32, i32
  }
  func.func @transform_2(%arg0: i32, %arg1: i32) -> (i32, i32) {
    %c0_i32 = arith.constant 0 : i32
    %c0_i32_0 = arith.constant 0 : i32
    return %c0_i32, %arg1 : i32, i32
  }
  func.func @transform_3(%arg0: i32, %arg1: i32) -> (i32, i32) {
    %c0_i32 = arith.constant 0 : i32
    return %arg0, %arg1 : i32, i32
  }
}

</mosaic_0001>

<bundles_post_ra>
// kernel: tpu_custom_call.1
= control target key start
LH: loop header
LB: loop body
LE: loop exit
PB: predicated region body
PF: predicated region fallthrough
CT: control target
= control target key end

     0   :  { %8 = vsyncpa [#allocation3], 0  ;;  %s1136_s0 = inlined_call_operand.hbm [shape: f32[128,128], index: 0, kind: input, shape index: {}]   ;;  %s1137_s1 = inlined_call_operand.hbm [shape: f32[128,128], index: 1, kind: input, shape index: {}]   ;;  %s1138_s2 = inlined_call_operand.vmem [shape: f32[1,128], index: 2, kind: input, shape index: {}]   ;;  %s1139_s3 = inlined_call_operand.hbm [shape: f32[128,128], index: 3, kind: output, shape index: {}]  }
   0x1   :  { %10 = vsyncpa [#allocation3 + $0x1], 0 }
   0x2   :  { %11 = vsyncpa [#allocation6], 0 }
   0x3   :  { %12 = vsyncpa [#allocation4], 0 }
   0x4   :  { %14 = vsyncpa [#allocation4 + $0x1], 0  ;;  %s894_s12 = smov 0   ;;  %s896_s13 = smov 0  }
   0x5   :  { %s898_s14 = smov 0   ;;  %s900_s15 = smov 0  }
   0x6   :  { %s902_s16 = smov 0   ;;  %s904_s17 = smov 0  }
   0x7 LB: > { %s507_s18 = sadd.s32 4294967295, %s865_s17   ;;  %s508_s19 = sadd.s32 4294967294, %s865_s17   ;;  %s865_s17 = sphi %s904_s17, %s20_s17   ;;  %s861_s16 = sphi %s902_s16, %s1163_s16   ;;  %s857_s15 = sphi %s900_s15, %s1162_s15   ;;  %s853_s14 = sphi %s898_s14, %s1161_s14   ;;  %s849_s13 = sphi %s896_s13, %s1160_s13   ;;  %s845_s12 = sphi %s894_s12, %s1159_s12  }
   0x8   : > { %p52_p0 = scmp.ne.s32.totalorder %s849_s13, %s845_s12  ;;  %p928_p1 = scmp.eq.s32.totalorder %s507_s18, 0 }
   0x9   : > { %p932_p2 = scmp.eq.s32.totalorder %s507_s18, 1  ;;  %p136_p3 = scmp.eq.s32.totalorder %s508_s19, 1 }
   0xa   : > { %s1144_s20 = scalar_select %p928_p1, 1, 0 }
   0xb   : > { %s1145_s21 = scalar_select %p932_p2, 1, 0 }
   0xc   : > { %p938_p4 = por %p928_p1, %p52_p0  ;;  %p509_p5 = scmp.ge.s32.totalorder %s865_s17, 1 }
   0xd   : > { %p943_p6 = por %p136_p3, %p52_p0  ;;  %p143_p7 = scmp.lt.s32.totalorder %s865_s17, 3 }
   0xe   : > { %s1146_s22 = scalar_select %p938_p4, 1, 0 }
   0xf   : > { %s1147_s23 = scalar_select %p943_p6, 1, 0 }
  0x10   : > { %p948_p8 = pnand %p509_p5, %p143_p7  ;;  %s867_s25 = smov [#allocation5]  }
  0x11   : > { %s157_s26 = sshll.u32 %s867_s25, 4  ;;  %s32_s28 = sadd.s32 1, %s861_s16  ;;  %s158_s26 = int_to_ptr.vmem [resolvable:$true] %s157_s26 }
  0x12   : > { %s1148_s24 = scalar_select %p948_p8, 1, 0 }
  0x13   : > { %p652_p9 = pneg %p948_p8  ;;  %s721_s4 = scalar_lea.hbm %s1137_s1, 2048 }
  0x14   : > { %p722_p12 = scmp.ne.s32.totalorder %s1137_s1, %s721_s4  ;;  %p728_p5 = scmp.lt.u32.totalorder %s721_s4, %s1137_s1 }
  0x15   : > { %p957_p11 = pnand %p652_p9, %p928_p1 }
  0x17   : > { %p723_p13 = pneg %p957_p11 }
  0x19   : > { %p724_p0 = pnand %p723_p13, %p722_p12 }
  0x1b   : > { %p725_p3 = pneg %p724_p0 }
  0x1d   : > { %p730_p7 = pnand %p728_p5, %p725_p3 }
  0x1f   : > { %733 = shalt.err (!%p730_p7)
}
  0x20   : > { %s734_s9 = scalar_lea.vmem %s158_s26, 2048  ;;  %p742_p1 = scmp.lt.s32.totalorder %s158_s26, %s158_s26 }
  0x21   : > { %p735_p9 = scmp.ne.s32.totalorder %s158_s26, %s734_s9  ;;  %p743_p4 = scmp.lt.s32.totalorder %s734_s9, %s734_s9 }
  0x23   : > { %p737_p10 = pnand %p735_p9, %p723_p13  ;;  %p744_p8 = por %p743_p4, %p742_p1 }
  0x25   : > { %p738_p6 = pneg %p737_p10 }
  0x27   : > { %p745_p2 = pnand %p744_p8, %p738_p6 }
  0x29   : > { %748 = shalt.err (!%p745_p2)
}
  0x2a   : > { %s868_s10 = smov 128   ;;  %s869_s11 = smov 8  }
  0x2b   : > { %655 = dma.hbm_to_vmem [thread:$0]  (!%p957_p11), %s1137_s1, 2048, %s158_s26, [#allocation6], %s868_s10, %s868_s10, %s869_s11  }
  0x2c   : > { %p34_p1 = scmp.ge.s32.totalorder %s32_s28, 2  ;;  %s39_s25 = sadd.s32 1, %s853_s14 }
  0x2d   : > { %p46_p2 = scmp.ne.s32.totalorder %s853_s14, %s849_s13  ;;  %p47_p4 = scmp.eq.s32.totalorder %s865_s17, 0 }
  0x2e   : > { %s1165_s28 = smov (%p34_p1, %s32_s28), 0  ;;  %p1151_p8 = scmp.ne.s32.totalorder %s1145_s21, 0 }
  0x2f   : > { %p987_p6 = por %p47_p4, %p46_p2  ;;  %s36_s30 = ssub.s32 %s861_s16, %s1165_s28 }
  0x30   : > { %p993_p10 = por %p1151_p8, %p46_p2  ;;  %p665_p12 = scmp.lt.s32.totalorder %s865_s17, 2 }
  0x31   : > { %p37_p11 = scmp.eq.s32.totalorder %s36_s30, 0  ;;  %s177_s26 = sand.u32 1, %s853_s14  }
  0x32   : > { %s513_s4 = sshll.u32 %s177_s26, 6  ;;  %s526_s6 = sshll.u32 %s861_s16, 10 }
  0x33   : > { %s1002_s5 = scalar_select %p37_p11, %s853_s14, %s39_s25  }
  0x34   : > { %s1008_s9 = scalar_lea.hbm %s1136_s0, %s526_s6  ;;  %s181_s21 = scalar_lea.vmem [#allocation2], %s513_s4 }
  0x35   : > { %s188_s18 = sshll.u32 %s181_s21, 4  ;;  %p1014_p13 = pnand %p665_p12, %p987_p6  ;;  %s1010_s18 = int_to_ptr.vmem [resolvable:$true] %s188_s18 }
  0x36   : > { %s1018_s25 = scalar_lea.sflag [#allocation3], %s177_s26  ;;  %s749_s30 = scalar_lea.hbm %s1008_s9, 1024 }
  0x37   : > { %p750_p0 = scmp.ne.s32.totalorder %s1008_s9, %s749_s30  ;;  %p751_p3 = pneg %p1014_p13 }
  0x38   : > { %s754_s29 = scalar_lea.hbm %s1136_s0, 2048  ;;  %p755_p9 = scmp.lt.u32.totalorder %s1008_s9, %s1136_s0 }
  0x39   : > { %p752_p5 = pnand %p751_p3, %p750_p0  ;;  %p756_p1 = scmp.lt.u32.totalorder %s754_s29, %s749_s30 }
  0x3a   : > { %p758_p4 = scmp.lt.u32.totalorder %s749_s30, %s1008_s9 }
  0x3b   : > { %p753_p7 = pneg %p752_p5  ;;  %p757_p2 = por %p756_p1, %p755_p9 }
  0x3d   : > { %p759_p6 = por %p758_p4, %p757_p2 }
  0x3f   : > { %p760_p8 = pnand %p759_p6, %p753_p7 }
  0x41   : > { %763 = shalt.err (!%p760_p8)
}
  0x42   : > { %s764_s26 = scalar_lea.vmem %s1010_s18, 1024  ;;  %s870_s21 = smov [#allocation2]  }
  0x43   : > { %p765_p12 = scmp.ne.s32.totalorder %s1010_s18, %s764_s26  ;;  %s769_s4 = sshll.u32 %s870_s21, 4  ;;  %s770_s4 = int_to_ptr.vmem [resolvable:$false] %s769_s4 }
  0x44   : > { %s771_s6 = scalar_lea.vmem %s770_s4, 2048  ;;  %p772_p5 = scmp.lt.s32.totalorder %s1010_s18, %s770_s4 }
  0x45   : > { %p767_p11 = pnand %p765_p12, %p751_p3  ;;  %p773_p9 = scmp.lt.s32.totalorder %s771_s6, %s764_s26 }
  0x47   : > { %p768_p0 = pneg %p767_p11  ;;  %p774_p1 = por %p773_p9, %p772_p5 }
  0x49   : > { %p775_p2 = pnand %p774_p1, %p768_p0 }
  0x4b   : > { %778 = shalt.err (!%p775_p2)
}
  0x4c   : > { %659 = dma.hbm_to_vmem [thread:$0]  (!%p1014_p13), %s1008_s9, 1024, %s1010_s18, %s1018_s25, %s868_s10, %s868_s10, %s869_s11  }
  0x4d   : > { %p1154_p3 = scmp.ne.s32.totalorder %s1148_s24, 0 }
  0x4e   : > { %s1052_s30 = sand.u32 (!%p1154_p3), 1, %s849_s13   ;;  %p1155_p7 = scmp.ne.s32.totalorder (!%p1154_p3), %s1146_s22, 0 }
  0x4f   : > { %200 = sbr.rel (%p1154_p3) target bundleno = 359 (0x167), region = 32  ;;  %s517_s29 = sshll.u32 (!%p1154_p3), %s1052_s30, 6 }
  0x50   : > { %s203_s7 = scalar_lea.sflag (!%p1154_p3), [#allocation3], %s1052_s30  ;;  %s1058_s19 = scalar_lea.vmem (!%p1154_p3), [#allocation2], %s517_s29 }
  0x56   : > { %832 = dma.done.wait (%p1155_p7), %s203_s7, 1024  }
  0x57   : > { %834 = vsyncadd (%p1155_p7), %s203_s7, 4294966272  ;;  %p1156_p13 = scmp.ne.s32.totalorder %s1144_s20, 0 }
  0x59   : > { %836 = dma.done.wait (%p1156_p13), [#allocation6], 2048  }
  0x5a   : > { %838 = vsyncadd (%p1156_p13), [#allocation6], 4294965248  ;;  %v249_v0 = vld [vmem:[#allocation5] sm:$0xff]  ;;  %v250_v1 = vld [vmem:[#allocation5 + $0x8] sm:$0xff]  ;;  %s235_s24 = scalar_lea.vmem [#allocation7], %s517_s29  ;;  %s527_s11 = sshll.u32 %s857_s15, 10 }
  0x5b   : > { %v251_v2 = vld [vmem:[#allocation5 + $0x10] sm:$0xff]  ;;  %v596_v3 = vpack.c.bf16 %v250_v1, %v249_v0  ;;  %v252_v4 = vld [vmem:[#allocation5 + $0x18] sm:$0xff]  ;;  %v253_v6 = vld [vmem:[#allocation5 + $0x20] sm:$0xff]  ;;  %s400_s10 = sshll.u32 %s235_s24, 4  ;;  %s1087_s15 = scalar_lea.hbm %s1139_s3, %s527_s11  ;;  %s1082_s10 = int_to_ptr.vmem [resolvable:$true] %s400_s10 }
  0x5c   : > { %v600_v5 = vpack.c.bf16 %v252_v4, %v251_v2  ;;  %v254_v7 = vld [vmem:[#allocation5 + $0x28] sm:$0xff]  ;;  %v241_v9 = vld [vmem:[%s1058_s19] sm:$0xff]  ;;  %v255_v11 = vld [vmem:[#allocation5 + $0x30] sm:$0xff]  ;;  %s386_s25 = scalar_lea.sflag [#allocation4], %s1052_s30  ;;  %s779_s8 = scalar_lea.vmem %s1082_s10, 1024 }
  0x5d   : > { %597 = vmatprep.subr.bf16.mxu0 %v596_v3  ;;  %628 = vmatprep.subr.bf16.mxu1 %v596_v3  ;;  %v604_v8 = vpack.c.bf16 %v254_v7, %v253_v6  ;;  %v245_v10 = vld [vmem:[%s1058_s19 + $0x20] sm:$0xff]  ;;  %v256_v12 = vld [vmem:[#allocation5 + $0x38] sm:$0xff]  ;;  %v258_v15 = vld [vmem:[#allocation5 + $0x48] sm:$0xff]  ;;  %p780_p4 = scmp.ne.s32.totalorder %s1082_s10, %s779_s8  ;;  %s871_s26 = smov [#allocation7]  }
  0x5e   : > { %599 = vmatpush3.bf16.msra.mxu0 %v596_v3  ;;  %636 = vmatpush3.bf16.msra.mxu1 %v596_v3  ;;  %v608_v13 = vpack.c.bf16 %v256_v12, %v255_v11  ;;  %v257_v14 = vld [vmem:[#allocation5 + $0x40] sm:$0xff]  ;;  %v259_v17 = vld [vmem:[#allocation5 + $0x50] sm:$0xff]  ;;  %v260_v18 = vld [vmem:[#allocation5 + $0x58] sm:$0xff]  ;;  %s783_s21 = sshll.u32 %s871_s26, 4  ;;  %s784_s21 = int_to_ptr.vmem [resolvable:$false] %s783_s21 }
  0x5f   : > { %601 = vmatprep.subr.bf16.mxu0 %v600_v5  ;;  %629 = vmatprep.subr.bf16.mxu1 %v600_v5  ;;  %v612_v16 = vpack.c.bf16 %v258_v15, %v257_v14  ;;  %v616_v19 = vpack.c.bf16 %v260_v18, %v259_v17  ;;  %v261_v20 = vld [vmem:[#allocation5 + $0x60] sm:$0xff]  ;;  %v262_v21 = vld [vmem:[#allocation5 + $0x68] sm:$0xff]  ;;  %v263_v23 = vld [vmem:[#allocation5 + $0x70] sm:$0xff]  ;;  %p781_p6 = pnand %p780_p4, %p993_p10  ;;  %s785_s4 = scalar_lea.vmem %s784_s21, 2048 }
  0x60   : > { %584 = vmatprep.mubr.f32.mxu0 %v241_v9  ;;  %590 = vmatprep.mubr.f32.mxu1 %v245_v10  ;;  %v620_v22 = vpack.c.bf16 %v262_v21, %v261_v20  ;;  %v264_v24 = vld [vmem:[#allocation5 + $0x78] sm:$0xff]  ;;  %v242_v26 = vld [vmem:[%s1058_s19 + $0x8] sm:$0xff]  ;;  %v243_v28 = vld [vmem:[%s1058_s19 + $0x10] sm:$0xff]  ;;  %p786_p12 = scmp.lt.s32.totalorder %s1082_s10, %s784_s21  ;;  %p787_p11 = scmp.lt.s32.totalorder %s785_s4, %s779_s8 }
  0x61   : > { %v624_v25 = vpack.c.bf16 %v264_v24, %v263_v23  ;;  %v246_v27 = vld [vmem:[%s1058_s19 + $0x28] sm:$0xff]  ;;  %v247_v29 = vld [vmem:[%s1058_s19 + $0x30] sm:$0xff]  ;;  %v244_v30 = vld [vmem:[%s1058_s19 + $0x18] sm:$0xff]  ;;  %p782_p8 = pneg %p781_p6 }
  0x62   : > { %603 = vmatpush3.bf16.msra.mxu0 %v600_v5  ;;  %637 = vmatpush3.bf16.msra.mxu1 %v600_v5  ;;  %v248_v31 = vld [vmem:[%s1058_s19 + $0x38] sm:$0xff]  ;;  %v520_v32 = vld [vmem:[%s1138_s2] ss:$0 sm:$0xff]  ;;  %p788_p0 = por %p787_p11, %p786_p12 }
  0x63   : > { %605 = vmatprep.subr.bf16.mxu0 %v604_v8  ;;  %630 = vmatprep.subr.bf16.mxu1 %v604_v8 }
  0x64   : > { %p789_p5 = pnand %p788_p0, %p782_p8 }
  0x66   : > { %607 = vmatpush3.bf16.msra.mxu0 %v604_v8  ;;  %638 = vmatpush3.bf16.msra.mxu1 %v604_v8 }
  0x67   : > { %609 = vmatprep.subr.bf16.mxu0 %v608_v13  ;;  %631 = vmatprep.subr.bf16.mxu1 %v608_v13 }
  0x6a   : > { %611 = vmatpush3.bf16.msra.mxu0 %v608_v13  ;;  %639 = vmatpush3.bf16.msra.mxu1 %v608_v13 }
  0x6b   : > { %613 = vmatprep.subr.bf16.mxu0 %v612_v16  ;;  %632 = vmatprep.subr.bf16.mxu1 %v612_v16 }
  0x6e   : > { %615 = vmatpush3.bf16.msra.mxu0 %v612_v16  ;;  %640 = vmatpush3.bf16.msra.mxu1 %v612_v16 }
  0x6f   : > { %617 = vmatprep.subr.bf16.mxu0 %v616_v19  ;;  %633 = vmatprep.subr.bf16.mxu1 %v616_v19 }
  0x72   : > { %619 = vmatpush3.bf16.msra.mxu0 %v616_v19  ;;  %641 = vmatpush3.bf16.msra.mxu1 %v616_v19 }
  0x73   : > { %621 = vmatprep.subr.bf16.mxu0 %v620_v22  ;;  %634 = vmatprep.subr.bf16.mxu1 %v620_v22 }
  0x76   : > { %623 = vmatpush3.bf16.msra.mxu0 %v620_v22  ;;  %642 = vmatpush3.bf16.msra.mxu1 %v620_v22 }
  0x77   : > { %625 = vmatprep.subr.bf16.mxu0 %v624_v25  ;;  %635 = vmatprep.subr.bf16.mxu1 %v624_v25 }
  0x7a   : > { %627 = vmatpush3.bf16.msra.mxu0 %v624_v25  ;;  %643 = vmatpush3.bf16.msra.mxu1 %v624_v25 }
  0x7d   : > { %585 = vmatmul.mubr.f32.vlgmr.msra.gmra.mrb[0].mxu0 %v242_v26  ;;  %591 = vmatmul.mubr.f32.vlgmr.msra.gmra.mrb[0].mxu1 %v246_v27 }
  0x7e   : > { %587 = vmatprep.mubr.f32.mxu0 %v243_v28  ;;  %593 = vmatprep.mubr.f32.mxu1 %v247_v29 }
  0x81   : > { %588 = vmatmul.mubr.f32.gmra.mrb[2].mxu0 %v244_v30  ;;  %594 = vmatmul.mubr.f32.gmra.mrb[2].mxu1 %v248_v31 }
 0x150   : > { %v586_v33 = vpop.f32.mrb[0].mxu0  ;;  %v592_v34 = vpop.f32.mrb[0].mxu1 }
 0x151   : > { %v344_v35 = vadd.f32 %v586_v33, %v520_v32  ;;  %v364_v36 = vadd.f32 %v592_v34, %v520_v32  ;;  %v338_v37 = vpop.f32.mrb[1].mxu0  ;;  %v358_v38 = vpop.f32.mrb[1].mxu1 }
 0x152   : > { %v339_v39 = vadd.f32 %v520_v32, %v338_v37  ;;  %v359_v40 = vadd.f32 %v520_v32, %v358_v38 }
 0x153   : > { %378 = vst [vmem:[%s235_s24 + $0x8] sm:$0xff] %v344_v35  ;;  %382 = vst [vmem:[%s235_s24 + $0x28] sm:$0xff] %v364_v36 }
 0x154   : > { %377 = vst [vmem:[%s235_s24] sm:$0xff] %v339_v39  ;;  %381 = vst [vmem:[%s235_s24 + $0x20] sm:$0xff] %v359_v40  ;;  %v589_v41 = vpop.f32.mrb[2].mxu0  ;;  %v595_v42 = vpop.f32.mrb[2].mxu1 }
 0x155   : > { %v354_v43 = vadd.f32 %v589_v41, %v520_v32  ;;  %v374_v44 = vadd.f32 %v595_v42, %v520_v32  ;;  %v348_v45 = vpop.f32.mrb[3].mxu0  ;;  %v368_v46 = vpop.f32.mrb[3].mxu1 }
 0x156   : > { %v349_v47 = vadd.f32 %v520_v32, %v348_v45  ;;  %v369_v48 = vadd.f32 %v520_v32, %v368_v46 }
 0x157   : > { %380 = vst [vmem:[%s235_s24 + $0x18] sm:$0xff] %v354_v43  ;;  %384 = vst [vmem:[%s235_s24 + $0x38] sm:$0xff] %v374_v44 }
 0x158   : > { %379 = vst [vmem:[%s235_s24 + $0x10] sm:$0xff] %v349_v47  ;;  %383 = vst [vmem:[%s235_s24 + $0x30] sm:$0xff] %v369_v48 }
 0x159   : > { %792 = shalt.err (!%p789_p5)
}
 0x15a   : > { %s793_s6 = scalar_lea.hbm %s1087_s15, 1024  ;;  %s797_s19 = scalar_lea.hbm %s1139_s3, 2048 }
 0x15b   : > { %p794_p9 = scmp.ne.s32.totalorder %s1087_s15, %s793_s6  ;;  %p798_p3 = scmp.lt.u32.totalorder %s1087_s15, %s1139_s3 }
 0x15c   : > { %p799_p7 = scmp.lt.u32.totalorder %s797_s19, %s793_s6  ;;  %p801_p4 = scmp.lt.u32.totalorder %s793_s6, %s1087_s15 }
 0x15d   : > { %p795_p1 = pnand %p794_p9, %p993_p10 }
 0x15e   : > { %p800_p13 = por %p799_p7, %p798_p3 }
 0x15f   : > { %p796_p2 = pneg %p795_p1 }
 0x160   : > { %p802_p6 = por %p801_p4, %p800_p13 }
 0x162   : > { %p803_p8 = pnand %p802_p6, %p796_p2 }
 0x164   : > { %806 = shalt.err (!%p803_p8)
}
 0x165   : > { %s872_s24 = smov 128   ;;  %s873_s11 = smov 8  }
 0x166   : > { %650 = dma.vmem_to_hbm [thread:$0]  (%p993_p10), %s1082_s10, 1024, %s1087_s15, %s386_s25, %s872_s24, %s872_s24, %s873_s11  }
 0x167 PF: > { %s415_s9 = sand.u32 1, %s845_s12   ;;  %p1157_p12 = scmp.ne.s32.totalorder %s1147_s23, 0 }
 0x168   : > { %p1158_p11 = scmp.ge.s32.totalorder %s865_s17, 2  ;;  %s416_s18 = scalar_lea.sflag [#allocation4], %s415_s9 }
 0x16a   : > { %p661_p0 = pnand %p1158_p11, %p1157_p12 }
 0x16c   : > { %840 = dma.done.wait (!%p661_p0), %s416_s18, 1024  }
 0x16d   : > { %842 = vsyncadd (!%p661_p0), %s416_s18, 4294966272  ;;  %s20_s17 = sadd.s32 1, %s865_s17   ;;  %s1159_s12 = smov %s849_s13 }
 0x16e   : > { %p17_p5 = scmp.ge.s32.totalorder %s20_s17, 4   ;;  %s1160_s13 = smov %s853_s14 }
 0x16f   : > { %s1161_s14 = smov %s1002_s5  ;;  %s1162_s15 = smov %s861_s16 }
 0x170   : > { %s1163_s16 = smov %s1165_s28  ;;  %19 = sbr.rel (!%p17_p5) target bundleno = 7 (0x7), region = 85 }
 0x177   :  { %421 = vsyncpa [#allocation3], 1 }
 0x178   :  { %423 = vsyncpa [#allocation3 + $0x1], 1 }
 0x179   :  { %424 = vsyncpa [#allocation6], 1 }
 0x17a   :  { %425 = vsyncpa [#allocation4], 1 }
 0x17b   :  { %427 = vsyncpa [#allocation4 + $0x1], 1 }

</bundles_post_ra>
